<compile_context>
chip_gen: v7x
topology: tpu7x:2x2x1
jax: 0.10.0
libtpu: 0.0.40
codegen_flags: <defaults>
</compile_context>

<pallas_src>
import functools

import jax
import jax.numpy as jnp
from jax.experimental import pallas as pl
from jax.experimental.pallas import tpu as pltpu


def _round_up(x: int, m: int) -> int:
    return (x + m - 1) // m * m


def _device_defaults():
    """Per-generation tiling defaults (token tile tm, hidden tile th, VMEM limit)."""
    kind = ""
    try:
        kind = jax.devices()[0].device_kind.lower()
    except Exception:
        pass
    if "v7" in kind:
        # v7x: 64 MiB VMEM/TC, 3.2 TB/s HBM -> big tm, smaller th, tight limit,
        # and 2 TCs (need >= 2 token tiles on the parallel axis).
        return dict(tm=512, th=256, vmem_limit_bytes=48 * 1024 * 1024,
                    two_cores=True)
    if "v6" in kind:
        # v6e: HBM-bound at tm=256 -> raise tm; 128 MiB VMEM allows a high limit.
        return dict(tm=512, th=512, vmem_limit_bytes=100 * 1024 * 1024,
                    two_cores=False)
    if "v5" in kind:
        # v5e: already MXU-bound at tm=256/th=512; keep double-buffer slack.
        return dict(tm=256, th=512, vmem_limit_bytes=100 * 1024 * 1024,
                    two_cores=False)
    # Unknown / interpret fallback.
    return dict(tm=256, th=512, vmem_limit_bytes=64 * 1024 * 1024,
                two_cores=False)


def _ffn_kernel(x_ref, wvT_ref, oT_ref, out_ref, acc_ref, *, th):
    # x_ref:   (tm, Cin)       token tile, original dtype (resident across j)
    # wvT_ref: (Cin, 2*th)     fused [wT tile j | vT tile j], compute dtype
    # oT_ref:  (th, Cout_p)    o^T tile along the hidden dim, compute dtype
    # out_ref: (tm, Cout_p)    output tile (written on last hidden step)
    # acc_ref: (tm, Cout_p)    f32 accumulator scratch
    j = pl.program_id(1)

    @pl.when(j == 0)
    def _():
        acc_ref[...] = jnp.zeros_like(acc_ref)

    # Cast activations inside the kernel (no extra wrapper HBM pass).
    x = x_ref[...].astype(wvT_ref.dtype)
    # Single fused MXU matmul for both gate projections, f32 accumulation.
    h = jnp.dot(x, wvT_ref[...], preferred_element_type=jnp.float32)
    h_w = h[:, :th]   # static, lane-tile-aligned slices (th % 128 == 0)
    h_v = h[:, th:]
    # SiLU gate in f32 for accuracy; downcast only for the o matmul.
    gated = (h_w * jax.nn.sigmoid(h_w)) * h_v
    acc_ref[...] += jnp.dot(
        gated.astype(oT_ref.dtype), oT_ref[...],
        preferred_element_type=jnp.float32)

    @pl.when(j == pl.num_programs(1) - 1)
    def _():
        out_ref[...] = acc_ref[...].astype(out_ref.dtype)


def prepare_ffn_params(w, v, o, *, compute_dtype=jnp.bfloat16, th=None):
    """One-time weight preparation (transpose + cast + pad + fuse). NOT per-step.

    w, v: (Hid, Cin)   o: (Cout, Hid)   -- PyTorch nn.Linear weight layout.
    """
    hid, cin = w.shape
    cout, _ = o.shape

    if th is None:
        th = _device_defaults()["th"]

    # Hidden padded only to the 128-lane boundary; pick th so it divides hid_p
    # exactly (no up-to-th padding waste in MXU flops / weight DMA).
    hid_p = _round_up(hid, 128)
    th = min(_round_up(th, 128), hid_p)
    while hid_p % th:
        th -= 128
    nj = hid_p // th
    cout_p = _round_up(cout, 128)

    wT = jnp.zeros((cin, hid_p), compute_dtype).at[:, :hid].set(
        w.T.astype(compute_dtype))
    vT = jnp.zeros((cin, hid_p), compute_dtype).at[:, :hid].set(
        v.T.astype(compute_dtype))
    # Interleave per hidden tile: columns [j*2*th : j*2*th+th] = wT tile j,
    # next th columns = vT tile j  ->  one BlockSpec / one DMA per step.
    wvT = jnp.stack(
        [wT.reshape(cin, nj, th), vT.reshape(cin, nj, th)], axis=2
    ).reshape(cin, nj * 2 * th)

    oT = jnp.zeros((hid_p, cout_p), compute_dtype).at[:hid, :cout].set(
        o.T.astype(compute_dtype))

    return dict(wvT=wvT, oT=oT, cin=cin, hid=hid, hid_p=hid_p,
                cout=cout, cout_p=cout_p, th=th, compute_dtype=compute_dtype)


def feed_forward(x, params, *, tm=None, vmem_limit_bytes=None, out_dtype=None):
    """x: (..., Cin) -> (..., Cout). `params` from prepare_ffn_params."""
    wvT, oT = params["wvT"], params["oT"]
    cin, hid, hid_p = params["cin"], params["hid"], params["hid_p"]
    cout, cout_p, th = params["cout"], params["cout_p"], params["th"]

    defaults = _device_defaults()
    if tm is None:
        tm = defaults["tm"]
        if jnp.dtype(params["compute_dtype"]) == jnp.dtype(jnp.float32):
            tm = max(128, tm // 2)   # f32 tiles are 2x the bytes
    if vmem_limit_bytes is None:
        vmem_limit_bytes = defaults["vmem_limit_bytes"]
    if out_dtype is None:
        out_dtype = x.dtype         # set to bf16 explicitly to halve writeback

    orig_shape = x.shape
    x2 = x.reshape(-1, cin)          # cast to compute dtype happens in-kernel
    M = x2.shape[0]

    # Token tile: as large as allowed, multiple of 8, never larger than M_p.
    tm = min(tm, _round_up(M, 8))
    if defaults["two_cores"]:
        # Guarantee >= 2 token tiles so the "parallel" i-axis shards across
        # both TensorCores on v7x (decode / short-sequence calls).
        tm = min(tm, max(8, _round_up(-(-M // 2), 8)))
    Mp = _round_up(M, tm)
    if Mp != M:
        x2 = jnp.pad(x2, ((0, Mp - M), (0, 0)))

    grid = (Mp // tm, hid_p // th)

    wbytes = (wvT.size * wvT.dtype.itemsize + oT.size * oT.dtype.itemsize)
    cost = pl.CostEstimate(
        flops=4 * M * cin * hid + 2 * M * hid * cout,
        transcendentals=M * hid,
        bytes_accessed=(x2.size * x2.dtype.itemsize
                        + Mp * cout_p * jnp.dtype(out_dtype).itemsize
                        + grid[0] * wbytes))

    out = pl.pallas_call(
        functools.partial(_ffn_kernel, th=th),
        out_shape=jax.ShapeDtypeStruct((Mp, cout_p), out_dtype),
        grid_spec=pltpu.PrefetchScalarGridSpec(
            num_scalar_prefetch=0,
            grid=grid,
            in_specs=[
                pl.BlockSpec((tm, cin), lambda i, j: (i, 0)),
                pl.BlockSpec((cin, 2 * th), lambda i, j: (0, j)),
                pl.BlockSpec((th, cout_p), lambda i, j: (j, 0)),
            ],
            out_specs=pl.BlockSpec((tm, cout_p), lambda i, j: (i, 0)),
            scratch_shapes=[pltpu.VMEM((tm, cout_p), jnp.float32)],
        ),
        compiler_params=pltpu.CompilerParams(
            dimension_semantics=("parallel", "arbitrary"),
            vmem_limit_bytes=vmem_limit_bytes),
        cost_estimate=cost,
    )(x2, wvT, oT)

    out = out[:M, :cout]
    return out.reshape(*orig_shape[:-1], cout)


if __name__ == "__main__":
    # Small shapes consistent with the module's forward: (batch, seq, in_channels)
    batch, seq = 2, 8
    in_channels, hidden_channels, out_channels = 32, 64, 32

    key = jax.random.PRNGKey(0)
    kx, kw, kv, ko = jax.random.split(key, 4)

    x = jax.random.normal(kx, (batch, seq, in_channels), dtype=jnp.float32)
    # PyTorch nn.Linear weight layout: (out_features, in_features)
    w = jax.random.normal(kw, (hidden_channels, in_channels), jnp.float32) * 0.05
    v = jax.random.normal(kv, (hidden_channels, in_channels), jnp.float32) * 0.05
    o = jax.random.normal(ko, (out_channels, hidden_channels), jnp.float32) * 0.05

    # Pure-JAX reference.
    hw = x @ w.T
    ref = (hw * jax.nn.sigmoid(hw) * (x @ v.T)) @ o.T

    # 1) f32 compute path (tight-ish check; tolerance allows for TPU matmul
    #    tiling / accumulation-order differences).
    params_f32 = prepare_ffn_params(w, v, o, compute_dtype=jnp.float32)
    y32 = jax.block_until_ready(feed_forward(x, params_f32))
    assert y32.shape == (batch, seq, out_channels)
    assert jnp.allclose(y32, ref, atol=2e-3, rtol=2e-3), "f32 path mismatch"

    # 2) bf16 compute path (default for MXU throughput; loose check).
    params_bf16 = prepare_ffn_params(w, v, o, compute_dtype=jnp.bfloat16)
    y16 = jax.block_until_ready(feed_forward(x, params_bf16))
    assert y16.shape == (batch, seq, out_channels)
    assert jnp.allclose(y16, ref, atol=3e-2, rtol=3e-2), "bf16 path mismatch"

    print("KERNEL_OK")
</pallas_src>

<mosaic_0001>
module attributes {stable_mosaic.version = 11 : i64} {
  func.func @_ffn_kernel(%arg0: i32, %arg1: i32, %arg2: memref<16x32xf32, #tpu.memory_space<vmem>>, %arg3: memref<32x256xf32, #tpu.memory_space<vmem>>, %arg4: memref<128x128xf32, #tpu.memory_space<vmem>>, %arg5: memref<16x128xf32, #tpu.memory_space<vmem>>, %arg6: memref<16x128xf32, #tpu.memory_space<vmem>>) attributes {dimension_semantics = [#tpu.dimension_semantics<parallel>, #tpu.dimension_semantics<arbitrary>], iteration_bounds = array<i64: 1, 1>, scalar_prefetch = 0 : i64, scratch_operands = 1 : i64, tpu.core_type = #tpu.core_type<tc>, window_params = [{transform_indices = @transform_0, window_bounds = array<i64: 16, 32>}, {transform_indices = @transform_1, window_bounds = array<i64: 32, 256>}, {transform_indices = @transform_2, window_bounds = array<i64: 128, 128>}, {transform_indices = @transform_3, window_bounds = array<i64: 16, 128>}]} {
    %c0_i32 = arith.constant 0 : i32
    %0 = arith.cmpi eq, %arg1, %c0_i32 : i32
    %1 = arith.extui %0 : i1 to i32
    %c0_i32_0 = arith.constant 0 : i32
    %2 = arith.cmpi ne, %1, %c0_i32_0 : i32
    scf.if %2 {
      %cst_14 = arith.constant 0.000000e+00 : f32
      %23 = vector.broadcast %cst_14 : f32 to vector<16x128xf32>
      %c0_15 = arith.constant 0 : index
      %c0_16 = arith.constant 0 : index
      %24 = vector.load %arg6[%c0_15, %c0_16] : memref<16x128xf32, #tpu.memory_space<vmem>>, vector<16x128xf32>
      tpu.vector_store %arg6[%c0_15, %c0_16], %23 {strides = array<i32>} : memref<16x128xf32, #tpu.memory_space<vmem>>, vector<16x128xf32>,
    } else {
    }
    %c0 = arith.constant 0 : index
    %c0_1 = arith.constant 0 : index
    %3 = vector.load %arg2[%c0, %c0_1] : memref<16x32xf32, #tpu.memory_space<vmem>>, vector<16x32xf32>
    %c0_2 = arith.constant 0 : index
    %c0_3 = arith.constant 0 : index
    %4 = vector.load %arg3[%c0_2, %c0_3] : memref<32x256xf32, #tpu.memory_space<vmem>>, vector<32x256xf32>
    %cst = arith.constant dense<0.000000e+00> : vector<16x256xf32>
    %5 = tpu.matmul %3, %4, %cst {dimension_numbers = #tpu.dot_dimension_numbers<[1], [0], [0], [1], [0, 0, 1, 1], [], []>} : vector<16x32xf32>, vector<32x256xf32>, vector<16x256xf32> -> vector<16x256xf32>
    %6 = vector.extract_strided_slice %5 {offsets = [0, 0], sizes = [16, 128], strides = [1, 1]} : vector<16x256xf32> to vector<16x128xf32>
    %7 = vector.extract_strided_slice %5 {offsets = [0, 128], sizes = [16, 128], strides = [1, 1]} : vector<16x256xf32> to vector<16x128xf32>
    %8 = arith.negf %6 : vector<16x128xf32>
    %9 = math.exp %8 : vector<16x128xf32>
    %cst_4 = arith.constant 1.000000e+00 : f32
    %10 = vector.broadcast %cst_4 : f32 to vector<16x128xf32>
    %11 = arith.addf %10, %9 : vector<16x128xf32>
    %12 = arith.divf %10, %11 : vector<16x128xf32>
    %13 = arith.mulf %6, %12 : vector<16x128xf32>
    %14 = arith.mulf %13, %7 : vector<16x128xf32>
    %c0_5 = arith.constant 0 : index
    %c0_6 = arith.constant 0 : index
    %15 = vector.load %arg6[%c0_5, %c0_6] : memref<16x128xf32, #tpu.memory_space<vmem>>, vector<16x128xf32>
    %c0_7 = arith.constant 0 : index
    %c0_8 = arith.constant 0 : index
    %16 = vector.load %arg4[%c0_7, %c0_8] : memref<128x128xf32, #tpu.memory_space<vmem>>, vector<128x128xf32>
    %cst_9 = arith.constant dense<0.000000e+00> : vector<16x128xf32>
    %17 = tpu.matmul %14, %16, %cst_9 {dimension_numbers = #tpu.dot_dimension_numbers<[1], [0], [0], [1], [0, 0, 1, 1], [], []>} : vector<16x128xf32>, vector<128x128xf32>, vector<16x128xf32> -> vector<16x128xf32>
    %18 = arith.addf %15, %17 : vector<16x128xf32>
    %c0_10 = arith.constant 0 : index
    %c0_11 = arith.constant 0 : index
    %19 = vector.load %arg6[%c0_10, %c0_11] : memref<16x128xf32, #tpu.memory_space<vmem>>, vector<16x128xf32>
    tpu.vector_store %arg6[%c0_10, %c0_11], %18 {strides = array<i32>} : memref<16x128xf32, #tpu.memory_space<vmem>>, vector<16x128xf32>,
    %c0_i32_12 = arith.constant 0 : i32
    %20 = arith.cmpi eq, %arg1, %c0_i32_12 : i32
    %21 = arith.extui %20 : i1 to i32
    %c0_i32_13 = arith.constant 0 : i32
    %22 = arith.cmpi ne, %21, %c0_i32_13 : i32
    scf.if %22 {
      %c0_14 = arith.constant 0 : index
      %c0_15 = arith.constant 0 : index
      %23 = vector.load %arg6[%c0_14, %c0_15] : memref<16x128xf32, #tpu.memory_space<vmem>>, vector<16x128xf32>
      %c0_16 = arith.constant 0 : index
      %c0_17 = arith.constant 0 : index
      %24 = vector.load %arg5[%c0_16, %c0_17] : memref<16x128xf32, #tpu.memory_space<vmem>>, vector<16x128xf32>
      tpu.vector_store %arg5[%c0_16, %c0_17], %23 {strides = array<i32>} : memref<16x128xf32, #tpu.memory_space<vmem>>, vector<16x128xf32>,
    } else {
    }
    return
  }
  func.func @transform_0(%arg0: i32, %arg1: i32) -> (i32, i32) {
    %c0_i32 = arith.constant 0 : i32
    %c0_i32_0 = arith.constant 0 : i32
    return %arg0, %c0_i32 : i32, i32
  }
  func.func @transform_1(%arg0: i32, %arg1: i32) -> (i32, i32) {
    %c0_i32 = arith.constant 0 : i32
    %c0_i32_0 = arith.constant 0 : i32
    return %c0_i32, %arg1 : i32, i32
  }
  func.func @transform_2(%arg0: i32, %arg1: i32) -> (i32, i32) {
    %c0_i32 = arith.constant 0 : i32
    %c0_i32_0 = arith.constant 0 : i32
    return %arg1, %c0_i32 : i32, i32
  }
  func.func @transform_3(%arg0: i32, %arg1: i32) -> (i32, i32) {
    %c0_i32 = arith.constant 0 : i32
    %c0_i32_0 = arith.constant 0 : i32
    return %arg0, %c0_i32 : i32, i32
  }
}

</mosaic_0001>

<bundles_post_ra>
// kernel: tpu_custom_call.1
= control target key start
LH: loop header
LB: loop body
LE: loop exit
PB: predicated region body
PF: predicated region fallthrough
CT: control target
= control target key end

     0   :  { %8 = vsyncpa [#allocation4], 0  ;;  %s588_s0 = inlined_call_operand.hbm [shape: f32[16,32], index: 0, kind: input, shape index: {}]   ;;  %s589_s1 = inlined_call_operand.hbm [shape: f32[32,256], index: 1, kind: input, shape index: {}]   ;;  %s590_s2 = inlined_call_operand.hbm [shape: f32[128,128], index: 2, kind: input, shape index: {}]   ;;  %s591_s3 = inlined_call_operand.hbm [shape: f32[16,128], index: 3, kind: output, shape index: {}]  }
   0x1   :  { %9 = vsyncpa [#allocation7], 0 }
   0x2   :  { %10 = vsyncpa [#allocation5], 0  ;;  %s502_s12 = smov [#allocation6]   ;;  %s408_s16 = scalar_lea.hbm %s589_s1, 1024 }
   0x3   :  { %s28_s13 = sshll.u32 %s502_s12, 4  ;;  %p409_p0 = scmp.ne.s32.totalorder %s589_s1, %s408_s16  ;;  %s29_s13 = int_to_ptr.vmem [resolvable:$true] %s28_s13 }
   0x4   :  { %p412_p1 = scmp.lt.u32.totalorder %s408_s16, %s589_s1 }
   0x6   :  { %p414_p2 = pnand %p412_p1, %p409_p0 }
   0x8   :  { %417 = shalt.err (!%p414_p2)
}
   0x9   :  { %s418_s21 = scalar_lea.vmem %s29_s13, 1024  ;;  %p423_p4 = scmp.lt.s32.totalorder %s29_s13, %s29_s13 }
   0xa   :  { %p419_p3 = scmp.ne.s32.totalorder %s29_s13, %s418_s21  ;;  %p424_p5 = scmp.lt.s32.totalorder %s418_s21, %s418_s21 }
   0xc   :  { %p425_p6 = por %p424_p5, %p423_p4 }
   0xe   :  { %p426_p7 = pnand %p425_p6, %p419_p3 }
  0x10   :  { %429 = shalt.err (!%p426_p7)
}
  0x11   :  { %s503_s22 = smov 256   ;;  %s504_s23 = smov 16  }
  0x12   :  { %34 = dma.hbm_to_vmem [thread:$0]  %s589_s1, 1024, %s29_s13, [#allocation7], %s503_s22, %s503_s22, %s504_s23  }
  0x13   :  { %s505_s26 = smov [#allocation3]   ;;  %s430_s30 = scalar_lea.hbm %s588_s0, 256 }
  0x14   :  { %s16_s27 = sshll.u32 %s505_s26, 4  ;;  %p431_p8 = scmp.ne.s32.totalorder %s588_s0, %s430_s30  ;;  %s17_s27 = int_to_ptr.vmem [resolvable:$true] %s16_s27 }
  0x15   :  { %p434_p9 = scmp.lt.u32.totalorder %s430_s30, %s588_s0 }
  0x17   :  { %p436_p10 = pnand %p434_p9, %p431_p8 }
  0x19   :  { %439 = shalt.err (!%p436_p10)
}
  0x1a   :  { %s440_s8 = scalar_lea.vmem %s17_s27, 256  ;;  %p445_p12 = scmp.lt.s32.totalorder %s17_s27, %s17_s27 }
  0x1b   :  { %p441_p11 = scmp.ne.s32.totalorder %s17_s27, %s440_s8  ;;  %p446_p13 = scmp.lt.s32.totalorder %s440_s8, %s440_s8 }
  0x1d   :  { %p447_p0 = por %p446_p13, %p445_p12 }
  0x1f   :  { %p448_p1 = pnand %p447_p0, %p441_p11 }
  0x21   :  { %451 = shalt.err (!%p448_p1)
}
  0x22   :  { %s506_s1 = smov 128   ;;  %s507_s9 = smov 8  }
  0x23   :  { %22 = dma.hbm_to_vmem [thread:$0]  %s588_s0, 256, %s17_s27, [#allocation4], %s506_s1, %s506_s1, %s507_s9  }
  0x24   :  { %s508_s12 = smov [#allocation8]   ;;  %s452_s16 = scalar_lea.hbm %s590_s2, 2048 }
  0x25   :  { %s40_s13 = sshll.u32 %s508_s12, 4  ;;  %p453_p2 = scmp.ne.s32.totalorder %s590_s2, %s452_s16  ;;  %s41_s13 = int_to_ptr.vmem [resolvable:$true] %s40_s13 }
  0x26   :  { %p456_p3 = scmp.lt.u32.totalorder %s452_s16, %s590_s2 }
  0x28   :  { %p458_p4 = pnand %p456_p3, %p453_p2 }
  0x2a   :  { %461 = shalt.err (!%p458_p4)
}
  0x2b   :  { %s462_s21 = scalar_lea.vmem %s41_s13, 2048  ;;  %p467_p6 = scmp.lt.s32.totalorder %s41_s13, %s41_s13 }
  0x2c   :  { %p463_p5 = scmp.ne.s32.totalorder %s41_s13, %s462_s21  ;;  %p468_p7 = scmp.lt.s32.totalorder %s462_s21, %s462_s21 }
  0x2e   :  { %p469_p8 = por %p468_p7, %p467_p6 }
  0x30   :  { %p470_p9 = pnand %p469_p8, %p463_p5 }
  0x32   :  { %473 = shalt.err (!%p470_p9)
}
  0x33   :  { %46 = dma.hbm_to_vmem [thread:$0]  %s590_s2, 2048, %s41_s13, [#allocation7], %s506_s1, %s506_s1, %s507_s9  }
  0x34   :  { %496 = dma.done.wait [#allocation4], 256  }
  0x35   :  { %497 = vsyncadd [#allocation4], 4294967040 }
  0x36   :  { %498 = dma.done.wait [#allocation7], 3072  }
  0x37   :  { %499 = vsyncadd [#allocation7], 4294964224  ;;  %v509_v0 = vmov 0.0   ;;  %v65_v1 = vld [vmem:[#allocation6 + $0x8] sm:$0xff]  ;;  %v67_v2 = vld [vmem:[#allocation6 + $0x18] sm:$0xff]  ;;  %vm72_vm0 = vcmask 261120  }
  0x38   :  { %143 = vmatprep.mubr.f32.mxu0 %v509_v0  ;;  %v64_v3 = vld [vmem:[#allocation6] sm:$0xff]  ;;  %v351_v4 = vpack.c.bf16 %v67_v2, %v65_v1  ;;  %v66_v5 = vld [vmem:[#allocation6 + $0x10] sm:$0xff]  ;;  %v69_v6 = vld [vmem:[#allocation6 + $0x28] sm:$0xff]  ;;  %s510_s2 = smov [#allocation9]  }
  0x39   :  { %v71_v7 = vld [vmem:[#allocation6 + $0x38] sm:$0xff]  ;;  %v353_v8 = vpack.c.bf16 %v66_v5, %v64_v3  ;;  %v68_v10 = vld [vmem:[#allocation6 + $0x20] sm:$0xff]  ;;  %v70_v11 = vld [vmem:[#allocation6 + $0x30] sm:$0xff]  ;;  %s281_s23 = sshll.u32 %s510_s2, 4  ;;  %s282_s23 = int_to_ptr.vmem [resolvable:$true] %s281_s23 }
  0x3a   :  { %v355_v9 = vpack.c.bf16 %v71_v7, %v69_v6  ;;  %352 = vmatprep.subr.bf16.mxu0 %v351_v4  ;;  %v357_v12 = vpack.c.bf16 %v70_v11, %v68_v10  ;;  %v62_v13 = vld [vmem:[#allocation3] sm:$0xff]  ;;  %v63_v14 = vld [vmem:[#allocation3 + $0x8] sm:$0xff]  ;;  %v174_v15 = vld [vmem:[#allocation8] sm:$0xff]  ;;  %s474_s24 = scalar_lea.vmem %s282_s23, 256  ;;  %p479_p11 = scmp.lt.s32.totalorder %s282_s23, %s282_s23 }
  0x3b   :  { %354 = vmatpush1.bf16.msra.mxu0 %v353_v8  ;;  %v175_v16 = vld [vmem:[#allocation8 + $0x8] sm:$0xff]  ;;  %v176_v18 = vld [vmem:[#allocation8 + $0x10] sm:$0xff]  ;;  %v177_v19 = vld [vmem:[#allocation8 + $0x18] sm:$0xff]  ;;  %p475_p10 = scmp.ne.s32.totalorder %s282_s23, %s474_s24  ;;  %p480_p12 = scmp.lt.s32.totalorder %s474_s24, %s474_s24 }
  0x3c   :  { %356 = vmatprep.subr.bf16.mxu0 %v355_v9  ;;  %v359_v17 = vpack.c.bf16 %v175_v16, %v174_v15  ;;  %v363_v20 = vpack.c.bf16 %v177_v19, %v176_v18  ;;  %v178_v21 = vld [vmem:[#allocation8 + $0x20] sm:$0xff]  ;;  %v179_v22 = vld [vmem:[#allocation8 + $0x28] sm:$0xff]  ;;  %v180_v24 = vld [vmem:[#allocation8 + $0x30] sm:$0xff] }
  0x3d   :  { %v367_v23 = vpack.c.bf16 %v179_v22, %v178_v21  ;;  %v181_v25 = vld [vmem:[#allocation8 + $0x38] sm:$0xff]  ;;  %v182_v27 = vld [vmem:[#allocation8 + $0x40] sm:$0xff]  ;;  %v183_v28 = vld [vmem:[#allocation8 + $0x48] sm:$0xff]  ;;  %p481_p13 = por %p480_p12, %p479_p11 }
  0x3e   :  { %360 = vmatprep.subr.bf16.mxu1 %v359_v17  ;;  %v371_v26 = vpack.c.bf16 %v181_v25, %v180_v24  ;;  %v375_v29 = vpack.c.bf16 %v183_v28, %v182_v27  ;;  %v184_v30 = vld [vmem:[#allocation8 + $0x50] sm:$0xff]  ;;  %v185_v31 = vld [vmem:[#allocation8 + $0x58] sm:$0xff]  ;;  %v186_v33 = vld [vmem:[#allocation8 + $0x60] sm:$0xff] }
  0x3f   :  { %358 = vmatpush1.bf16.msra.mxu0 %v357_v12  ;;  %362 = vmatpush3.bf16.msra.mxu1 %v359_v17  ;;  %v379_v32 = vpack.c.bf16 %v185_v31, %v184_v30  ;;  %v187_v34 = vld [vmem:[#allocation8 + $0x68] sm:$0xff]  ;;  %v188_v36 = vld [vmem:[#allocation8 + $0x70] sm:$0xff]  ;;  %v189_v37 = vld [vmem:[#allocation8 + $0x78] sm:$0xff]  ;;  %p482_p0 = pnand %p481_p13, %p475_p10 }
  0x40   :  { %364 = vmatprep.subr.bf16.mxu1 %v363_v20  ;;  %v383_v35 = vpack.c.bf16 %v187_v34, %v186_v33  ;;  %v387_v38 = vpack.c.bf16 %v189_v37, %v188_v36 }
  0x42   :  { %294 = vmatmul.mubr.msk.f32.vlgmr.msra.gmra.mrb[0].mxu0 %vm72_vm0, %v62_v13 }
  0x43   :  { %149 = vmatprep.mubr.f32.mxu0 %v509_v0  ;;  %366 = vmatpush3.bf16.msra.mxu1 %v363_v20 }
  0x44   :  { %368 = vmatprep.subr.bf16.mxu1 %v367_v23 }
  0x46   :  { %295 = vmatmul.mubr.msk.f32.gmra.mrb[2].mxu0 %vm72_vm0, %v63_v14 }
  0x47   :  { %370 = vmatpush3.bf16.msra.mxu1 %v367_v23 }
  0x48   :  { %372 = vmatprep.subr.bf16.mxu1 %v371_v26 }
  0x4b   :  { %374 = vmatpush3.bf16.msra.mxu1 %v371_v26 }
  0x4c   :  { %376 = vmatprep.subr.bf16.mxu1 %v375_v29 }
  0x4f   :  { %378 = vmatpush3.bf16.msra.mxu1 %v375_v29 }
  0x50   :  { %380 = vmatprep.subr.bf16.mxu1 %v379_v32 }
  0x53   :  { %382 = vmatpush3.bf16.msra.mxu1 %v379_v32 }
  0x54   :  { %384 = vmatprep.subr.bf16.mxu1 %v383_v35 }
  0x57   :  { %386 = vmatpush3.bf16.msra.mxu1 %v383_v35 }
  0x58   :  { %388 = vmatprep.subr.bf16.mxu1 %v387_v38 }
  0x5b   :  { %390 = vmatpush3.bf16.msra.mxu1 %v387_v38 }
 0x115   :  { %v145_v39 = vpop.f32.mrb[0].mxu0 }
 0x116   :  { %v296_v40 = vmul.f32 -1.442695, %v145_v39  ;;  %v147_v41 = vpop.f32.mrb[1].mxu0 }
 0x118   :  { %400 = vpow2.f32 %v296_v40 }
 0x119   :  { %v151_v42 = vpop.f32.mrb[2].mxu0 }
 0x11a   :  { %v297_v43 = vmul.f32 -1.442695, %v151_v42  ;;  %v153_v44 = vpop.f32.mrb[3].mxu0 }
 0x11c   :  { %402 = vpow2.f32 %v297_v43 }
 0x122   :  { %v401_v45 = vpop.eup %400 }
 0x123   :  { %v162_v46 = vadd.f32 1.0, %v401_v45 }
 0x125   :  { %404 = vrcp.f32 %v162_v46 }
 0x126   :  { %v403_v47 = vpop.eup %402 }
 0x127   :  { %v163_v48 = vadd.f32 1.0, %v403_v47 }
 0x129   :  { %406 = vrcp.f32 %v163_v48 }
 0x12f   :  { %v405_v49 = vpop.eup %404 }
 0x130   :  { %v168_v50 = vmul.f32 %v405_v49, %v145_v39 }
 0x132   :  { %v170_v51 = vmul.f32 %v168_v50, %v147_v41 }
 0x133   :  { %v407_v52 = vpop.eup %406 }
 0x134   :  { %v169_v53 = vmul.f32 %v407_v52, %v151_v42  ;;  %348 = vmatprep.mubr.f32.mxu1 %v170_v51 }
 0x136   :  { %v171_v54 = vmul.f32 %v169_v53, %v153_v44 }
 0x138   :  { %349 = vmatmul.mubr.f32.vlgmr.msra.gmra.mrb[0].mxu1 %v171_v54 }
 0x20b   :  { %v350_v55 = vpop.f32.mrb[0].mxu1 }
 0x20c   :  { %275 = vst [vmem:[#allocation9 + $0x8] sm:$0xff] %v350_v55  ;;  %v256_v56 = vpop.f32.mrb[1].mxu1 }
 0x20d   :  { %274 = vst [vmem:[#allocation9] sm:$0xff] %v256_v56 }
 0x20e   :  { %485 = shalt.err (!%p482_p0)
}
 0x20f   :  { %s486_s27 = scalar_lea.hbm %s591_s3, 256 }
 0x210   :  { %p487_p1 = scmp.ne.s32.totalorder %s591_s3, %s486_s27  ;;  %p490_p2 = scmp.lt.u32.totalorder %s486_s27, %s591_s3 }
 0x212   :  { %p492_p3 = pnand %p490_p2, %p487_p1 }
 0x214   :  { %495 = shalt.err (!%p492_p3)
}
 0x215   :  { %287 = dma.vmem_to_hbm [thread:$0]  %s282_s23, 256, %s591_s3, [#allocation5], %s506_s1, %s506_s1, %s507_s9  }
 0x216   :  { %500 = dma.done.wait [#allocation5], 256  }
 0x217   :  { %501 = vsyncadd [#allocation5], 4294967040 }
 0x218   :  { %291 = vsyncpa [#allocation4], 1 }
 0x219   :  { %292 = vsyncpa [#allocation7], 1 }
 0x21a   :  { %293 = vsyncpa [#allocation5], 1 }

</bundles_post_ra>
